<compile_context>
chip_gen: v7x
topology: tpu7x:2x2x1
jax: 0.10.0
libtpu: 0.0.40
codegen_flags: <defaults>
</compile_context>

<pallas_src>
import jax
import jax.numpy as jnp
from jax.experimental import pallas as pl
from jax.experimental.pallas import tpu as pltpu

NUM_HEADS = 6    # mt_1..4, ess_1, ess_2
HEAD_PAD = 8     # heads padded to one sublane group


def _cdiv(a, b):
    return -(-a // b)


def _round_up(n, m):
    return _cdiv(n, m) * m


def policy_net_kernel(x_ref, w1_ref, b1_ref, w2_ref, b2_ref,
                      wht_ref, bht_ref, scale_ref, offset_ref, out_ref):
    # Cast x to the matmul dtype inside the kernel (no extra wrapper pass).
    x = x_ref[...].astype(w1_ref.dtype)

    # fc1 + relu   (b_tile, S) @ (S, H1) -> (b_tile, H1), f32 accumulation.
    h = jnp.dot(x, w1_ref[...], preferred_element_type=jnp.float32) + b1_ref[...]
    h = jnp.maximum(h, 0.0)

    # fc2 + relu   (b_tile, H1) @ (H1, H2) -> (b_tile, H2)
    h = jnp.dot(h.astype(w2_ref.dtype), w2_ref[...],
                preferred_element_type=jnp.float32) + b2_ref[...]
    h = jnp.maximum(h, 0.0)

    # Fused heads, transposed output: wht is (HEAD_PAD, H2); contract H2 of
    # both operands -> (HEAD_PAD, b_tile) with the batch on the lane axis.
    y = jax.lax.dot_general(
        wht_ref[...], h.astype(wht_ref.dtype),
        dimension_numbers=(((1,), (1,)), ((), ())),
        preferred_element_type=jnp.float32) + bht_ref[...]

    # Epilogue in f32 (v5e-safe): per-head scale/offset broadcast over lanes.
    # Only HEAD_PAD (=8) rows of tanh, not 128.
    out_ref[...] = jnp.tanh(y) * scale_ref[...] + offset_ref[...]


def prepare_params(params, matmul_dtype=jnp.bfloat16):
    """One-time parameter prep (hoisted out of the per-step forward).

    Transposes + zero-pads the fused head to (HEAD_PAD, H2) on the sublane
    axis and casts the matmul operands to `matmul_dtype`.  bf16 is safe on all
    generations (f32 accumulation, f32 epilogue); use jnp.float32 when
    bit-tight accuracy matters.
    """
    (w1, b1, w2, b2, wh, bh, scale, offset) = params
    h2dim = w2.shape[1]
    wht = jnp.zeros((HEAD_PAD, h2dim), jnp.float32).at[:NUM_HEADS].set(wh.T)
    bht = jnp.zeros((HEAD_PAD, 1), jnp.float32).at[:NUM_HEADS].set(bh.T)
    scale_t = jnp.zeros((HEAD_PAD, 1), jnp.float32).at[:NUM_HEADS].set(scale.T)
    offset_t = jnp.zeros((HEAD_PAD, 1), jnp.float32).at[:NUM_HEADS].set(offset.T)
    return (w1.astype(matmul_dtype), b1,
            w2.astype(matmul_dtype), b2,
            wht.astype(matmul_dtype), bht, scale_t, offset_t)


def _choose_b_tile(B, target_tile, min_grid_steps):
    # Pick the tile to (a) stay near target_tile so the per-step overhead is
    # amortized, (b) minimize batch padding for awkward B, and (c) keep the
    # batch (lane) axis 128-aligned whenever the grid has >1 step so the
    # output store stays lane-dense and the block shape is legal.
    n_tiles = max(min_grid_steps, _cdiv(B, target_tile))
    b_tile = _cdiv(B, n_tiles)
    return _round_up(b_tile, 128 if n_tiles > 1 else 8)


def policy_net_forward_raw(x, prepared, *, b_tile=None, target_tile=1024,
                           min_grid_steps=1):
    """Hot path.  Returns the transposed padded head slab (HEAD_PAD, padded_B)
    float32; rows 0..5 are [mt_1..4, ess_1, ess_2], columns 0..B-1 are valid.
    Pass min_grid_steps=2 on v7x so both TensorCores get grid steps."""
    (w1c, b1, w2c, b2, wht, bht, scale_t, offset_t) = prepared
    B, state_dim = x.shape
    h1 = w1c.shape[1]
    h2 = w2c.shape[1]

    if b_tile is None:
        b_tile = _choose_b_tile(B, target_tile, min_grid_steps)
    padded_B = _round_up(B, b_tile)
    if padded_B != B:
        x = jnp.pad(x, ((0, padded_B - B), (0, 0)))

    grid = (padded_B // b_tile,)
    const = lambda i: (0, 0)  # weights/biases stay VMEM-resident, DMA'd once

    in_specs = [
        pl.BlockSpec((b_tile, state_dim), lambda i: (i, 0)),   # x tile
        pl.BlockSpec((state_dim, h1), const),                  # w1
        pl.BlockSpec((1, h1), const),                          # b1
        pl.BlockSpec((h1, h2), const),                         # w2
        pl.BlockSpec((1, h2), const),                          # b2
        pl.BlockSpec((HEAD_PAD, h2), const),                   # wh^T (padded)
        pl.BlockSpec((HEAD_PAD, 1), const),                    # bh^T
        pl.BlockSpec((HEAD_PAD, 1), const),                    # scale
        pl.BlockSpec((HEAD_PAD, 1), const),                    # offset
    ]
    out_specs = pl.BlockSpec((HEAD_PAD, b_tile), lambda i: (0, i))
    out_shape = jax.ShapeDtypeStruct((HEAD_PAD, padded_B), jnp.float32)

    itemsize = jnp.dtype(w1c.dtype).itemsize
    cost = pl.CostEstimate(
        flops=2 * padded_B * (state_dim * h1 + h1 * h2 + h2 * HEAD_PAD),
        transcendentals=padded_B * HEAD_PAD,
        bytes_accessed=(padded_B * state_dim * x.dtype.itemsize        # x in
                        + HEAD_PAD * padded_B * 4                      # out
                        + (state_dim * h1 + h1 * h2 + HEAD_PAD * h2) * itemsize
                        + (h1 + h2 + 3 * HEAD_PAD) * 4),               # biases etc.
    )

    return pl.pallas_call(
        policy_net_kernel,
        out_shape=out_shape,
        grid=grid,
        in_specs=in_specs,
        out_specs=out_specs,
        compiler_params=pltpu.CompilerParams(
            dimension_semantics=("parallel",),  # shard batch across TCs on v7x
        ),
        cost_estimate=cost,
    )(x, w1c, b1, w2c, b2, wht, bht, scale_t, offset_t)


def policy_net_forward(x, prepared, **kwargs):
    """PyTorch-compatible convenience path: returns (B, 6) float32 actions.

    The narrowing slice+transpose now reads only the tiny (8, padded_B) slab
    (16x smaller than before); fused consumers should use the raw path."""
    B = x.shape[0]
    out = policy_net_forward_raw(x, prepared, **kwargs)
    return out[:NUM_HEADS, :B].T


def init_params(key, state_dim, hidden_dim_1, hidden_dim_2, action_bound):
    """Deterministic PyTorch-Linear-style init: U(-1/sqrt(fan_in), 1/sqrt(fan_in)).
    Weights are (in_features, out_features), i.e. transposed vs torch."""
    ks = jax.random.split(key, 3)

    def lin(k, fan_in, fan_out):
        kw, kb = jax.random.split(k)
        bound = 1.0 / jnp.sqrt(fan_in)
        w = jax.random.uniform(kw, (fan_in, fan_out), jnp.float32, -bound, bound)
        b = jax.random.uniform(kb, (1, fan_out), jnp.float32, -bound, bound)
        return w, b

    w1, b1 = lin(ks[0], state_dim, hidden_dim_1)
    w2, b2 = lin(ks[1], hidden_dim_1, hidden_dim_2)

    # Six scalar heads fused into one (hidden_dim_2, 6) linear.
    head_ws, head_bs = [], []
    for i in range(NUM_HEADS):
        w, b = lin(jax.random.fold_in(ks[2], i), hidden_dim_2, 1)
        head_ws.append(w)
        head_bs.append(b)
    wh = jnp.concatenate(head_ws, axis=1)   # (hidden_dim_2, 6)
    bh = jnp.concatenate(head_bs, axis=1)   # (1, 6)

    half = [0.5 * action_bound['max_mt_1'],
            0.5 * action_bound['max_mt_2'],
            0.5 * action_bound['max_mt_3'],
            0.5 * action_bound['max_mt_4']]
    scale = jnp.array([half + [1.0, 1.0]], dtype=jnp.float32)    # (1, 6)
    offset = jnp.array([half + [0.0, 0.0]], dtype=jnp.float32)   # (1, 6)

    return (w1, b1, w2, b2, wh, bh, scale, offset)


def reference_forward(x, params):
    """Plain-JAX f32 reference mirroring the PyTorch forward."""
    (w1, b1, w2, b2, wh, bh, scale, offset) = params
    h = jnp.maximum(x @ w1 + b1, 0.0)
    h = jnp.maximum(h @ w2 + b2, 0.0)
    y = h @ wh + bh
    return jnp.tanh(y) * scale + offset


if __name__ == "__main__":
    key = jax.random.PRNGKey(0)
    k_param, k_x = jax.random.split(key)

    batch = 2
    state_dim = 16
    hidden_dim_1 = 32
    hidden_dim_2 = 32
    action_bound = {'max_mt_1': 2.0, 'max_mt_2': 3.0,
                    'max_mt_3': 4.0, 'max_mt_4': 5.0}

    params = init_params(k_param, state_dim, hidden_dim_1, hidden_dim_2,
                         action_bound)
    x = jax.random.normal(k_x, (batch, state_dim), dtype=jnp.float32)

    ref = reference_forward(x, params)

    # f32 matmul path: tight check.
    prep_f32 = prepare_params(params, matmul_dtype=jnp.float32)
    out_f32 = jax.block_until_ready(policy_net_forward(x, prep_f32))
    assert out_f32.shape == (batch, NUM_HEADS), out_f32.shape
    assert jnp.allclose(out_f32, ref, atol=1e-5, rtol=1e-5), (out_f32, ref)

    # bf16 matmul-input path (default / fast on all generations): loose check.
    prep_bf16 = prepare_params(params, matmul_dtype=jnp.bfloat16)
    out_bf16 = jax.block_until_ready(policy_net_forward(x, prep_bf16))
    assert out_bf16.shape == (batch, NUM_HEADS), out_bf16.shape
    assert jnp.allclose(out_bf16, ref, atol=5e-2, rtol=5e-2), (out_bf16, ref)

    # Raw (transposed, padded) hot-path output also works.
    raw = jax.block_until_ready(policy_net_forward_raw(x, prep_f32))
    assert raw.shape[0] == HEAD_PAD and raw.shape[1] >= batch, raw.shape
    assert jnp.allclose(raw[:NUM_HEADS, :batch].T, ref, atol=1e-5, rtol=1e-5)

    print("KERNEL_OK")
</pallas_src>

<mosaic_0001>
module attributes {stable_mosaic.version = 11 : i64} {
  func.func @policy_net_kernel(%arg0: i32, %arg1: memref<8x16xf32, #tpu.memory_space<vmem>>, %arg2: memref<16x32xf32, #tpu.memory_space<vmem>>, %arg3: memref<1x32xf32, #tpu.memory_space<vmem>>, %arg4: memref<32x32xf32, #tpu.memory_space<vmem>>, %arg5: memref<1x32xf32, #tpu.memory_space<vmem>>, %arg6: memref<8x32xf32, #tpu.memory_space<vmem>>, %arg7: memref<8x1xf32, #tpu.memory_space<vmem>>, %arg8: memref<8x1xf32, #tpu.memory_space<vmem>>, %arg9: memref<8x1xf32, #tpu.memory_space<vmem>>, %arg10: memref<8x8xf32, #tpu.memory_space<vmem>>) attributes {dimension_semantics = [#tpu.dimension_semantics<parallel>], iteration_bounds = array<i64: 1>, scalar_prefetch = 0 : i64, scratch_operands = 0 : i64, tpu.core_type = #tpu.core_type<tc>, window_params = [{transform_indices = @transform_0, window_bounds = array<i64: 8, 16>}, {pipeline_mode = #tpu.pipeline_mode<synchronous>, transform_indices = @transform_1, window_bounds = array<i64: 16, 32>}, {pipeline_mode = #tpu.pipeline_mode<synchronous>, transform_indices = @transform_2, window_bounds = array<i64: 1, 32>}, {pipeline_mode = #tpu.pipeline_mode<synchronous>, transform_indices = @transform_3, window_bounds = array<i64: 32, 32>}, {pipeline_mode = #tpu.pipeline_mode<synchronous>, transform_indices = @transform_4, window_bounds = array<i64: 1, 32>}, {pipeline_mode = #tpu.pipeline_mode<synchronous>, transform_indices = @transform_5, window_bounds = array<i64: 8, 32>}, {pipeline_mode = #tpu.pipeline_mode<synchronous>, transform_indices = @transform_6, window_bounds = array<i64: 8, 1>}, {pipeline_mode = #tpu.pipeline_mode<synchronous>, transform_indices = @transform_7, window_bounds = array<i64: 8, 1>}, {pipeline_mode = #tpu.pipeline_mode<synchronous>, transform_indices = @transform_8, window_bounds = array<i64: 8, 1>}, {transform_indices = @transform_9, window_bounds = array<i64: 8, 8>}]} {
    %c0 = arith.constant 0 : index
    %c0_0 = arith.constant 0 : index
    %0 = vector.load %arg1[%c0, %c0_0] : memref<8x16xf32, #tpu.memory_space<vmem>>, vector<8x16xf32>
    %c0_1 = arith.constant 0 : index
    %c0_2 = arith.constant 0 : index
    %1 = vector.load %arg2[%c0_1, %c0_2] : memref<16x32xf32, #tpu.memory_space<vmem>>, vector<16x32xf32>
    %cst = arith.constant dense<0.000000e+00> : vector<8x32xf32>
    %2 = tpu.matmul %0, %1, %cst {dimension_numbers = #tpu.dot_dimension_numbers<[1], [0], [0], [1], [0, 0, 1, 1], [], []>} : vector<8x16xf32>, vector<16x32xf32>, vector<8x32xf32> -> vector<8x32xf32>
    %c0_3 = arith.constant 0 : index
    %c0_4 = arith.constant 0 : index
    %3 = vector.load %arg3[%c0_3, %c0_4] : memref<1x32xf32, #tpu.memory_space<vmem>>, vector<1x32xf32>
    %4 = vector.broadcast %3 : vector<1x32xf32> to vector<8x32xf32>
    %5 = arith.addf %2, %4 : vector<8x32xf32>
    %cst_5 = arith.constant 0.000000e+00 : f32
    %6 = vector.broadcast %cst_5 : f32 to vector<8x32xf32>
    %7 = arith.maximumf %5, %6 : vector<8x32xf32>
    %c0_6 = arith.constant 0 : index
    %c0_7 = arith.constant 0 : index
    %8 = vector.load %arg4[%c0_6, %c0_7] : memref<32x32xf32, #tpu.memory_space<vmem>>, vector<32x32xf32>
    %cst_8 = arith.constant dense<0.000000e+00> : vector<8x32xf32>
    %9 = tpu.matmul %7, %8, %cst_8 {dimension_numbers = #tpu.dot_dimension_numbers<[1], [0], [0], [1], [0, 0, 1, 1], [], []>} : vector<8x32xf32>, vector<32x32xf32>, vector<8x32xf32> -> vector<8x32xf32>
    %c0_9 = arith.constant 0 : index
    %c0_10 = arith.constant 0 : index
    %10 = vector.load %arg5[%c0_9, %c0_10] : memref<1x32xf32, #tpu.memory_space<vmem>>, vector<1x32xf32>
    %11 = vector.broadcast %10 : vector<1x32xf32> to vector<8x32xf32>
    %12 = arith.addf %9, %11 : vector<8x32xf32>
    %cst_11 = arith.constant 0.000000e+00 : f32
    %13 = vector.broadcast %cst_11 : f32 to vector<8x32xf32>
    %14 = arith.maximumf %12, %13 : vector<8x32xf32>
    %c0_12 = arith.constant 0 : index
    %c0_13 = arith.constant 0 : index
    %15 = vector.load %arg6[%c0_12, %c0_13] : memref<8x32xf32, #tpu.memory_space<vmem>>, vector<8x32xf32>
    %cst_14 = arith.constant dense<0.000000e+00> : vector<8x8xf32>
    %16 = tpu.matmul %15, %14, %cst_14 {dimension_numbers = #tpu.dot_dimension_numbers<[1], [1], [0], [0], [0, 0, 1, 0], [], []>} : vector<8x32xf32>, vector<8x32xf32>, vector<8x8xf32> -> vector<8x8xf32>
    %c0_15 = arith.constant 0 : index
    %c0_16 = arith.constant 0 : index
    %17 = vector.load %arg7[%c0_15, %c0_16] : memref<8x1xf32, #tpu.memory_space<vmem>>, vector<8x1xf32>
    %18 = vector.broadcast %17 : vector<8x1xf32> to vector<8x8xf32>
    %19 = arith.addf %16, %18 : vector<8x8xf32>
    %20 = math.tanh %19 : vector<8x8xf32>
    %c0_17 = arith.constant 0 : index
    %c0_18 = arith.constant 0 : index
    %21 = vector.load %arg8[%c0_17, %c0_18] : memref<8x1xf32, #tpu.memory_space<vmem>>, vector<8x1xf32>
    %22 = vector.broadcast %21 : vector<8x1xf32> to vector<8x8xf32>
    %23 = arith.mulf %20, %22 : vector<8x8xf32>
    %c0_19 = arith.constant 0 : index
    %c0_20 = arith.constant 0 : index
    %24 = vector.load %arg9[%c0_19, %c0_20] : memref<8x1xf32, #tpu.memory_space<vmem>>, vector<8x1xf32>
    %25 = vector.broadcast %24 : vector<8x1xf32> to vector<8x8xf32>
    %26 = arith.addf %23, %25 : vector<8x8xf32>
    %c0_21 = arith.constant 0 : index
    %c0_22 = arith.constant 0 : index
    %27 = vector.load %arg10[%c0_21, %c0_22] : memref<8x8xf32, #tpu.memory_space<vmem>>, vector<8x8xf32>
    tpu.vector_store %arg10[%c0_21, %c0_22], %26 {strides = array<i32>} : memref<8x8xf32, #tpu.memory_space<vmem>>, vector<8x8xf32>,
    return
  }
  func.func @transform_0(%arg0: i32) -> (i32, i32) {
    %c0_i32 = arith.constant 0 : i32
    %c0_i32_0 = arith.constant 0 : i32
    return %arg0, %c0_i32 : i32, i32
  }
  func.func @transform_1(%arg0: i32) -> (i32, i32) {
    %c0_i32 = arith.constant 0 : i32
    %c0_i32_0 = arith.constant 0 : i32
    %c0_i32_1 = arith.constant 0 : i32
    return %c0_i32, %c0_i32_0 : i32, i32
  }
  func.func @transform_2(%arg0: i32) -> (i32, i32) {
    %c0_i32 = arith.constant 0 : i32
    %c0_i32_0 = arith.constant 0 : i32
    %c0_i32_1 = arith.constant 0 : i32
    return %c0_i32, %c0_i32_0 : i32, i32
  }
  func.func @transform_3(%arg0: i32) -> (i32, i32) {
    %c0_i32 = arith.constant 0 : i32
    %c0_i32_0 = arith.constant 0 : i32
    %c0_i32_1 = arith.constant 0 : i32
    return %c0_i32, %c0_i32_0 : i32, i32
  }
  func.func @transform_4(%arg0: i32) -> (i32, i32) {
    %c0_i32 = arith.constant 0 : i32
    %c0_i32_0 = arith.constant 0 : i32
    %c0_i32_1 = arith.constant 0 : i32
    return %c0_i32, %c0_i32_0 : i32, i32
  }
  func.func @transform_5(%arg0: i32) -> (i32, i32) {
    %c0_i32 = arith.constant 0 : i32
    %c0_i32_0 = arith.constant 0 : i32
    %c0_i32_1 = arith.constant 0 : i32
    return %c0_i32, %c0_i32_0 : i32, i32
  }
  func.func @transform_6(%arg0: i32) -> (i32, i32) {
    %c0_i32 = arith.constant 0 : i32
    %c0_i32_0 = arith.constant 0 : i32
    %c0_i32_1 = arith.constant 0 : i32
    return %c0_i32, %c0_i32_0 : i32, i32
  }
  func.func @transform_7(%arg0: i32) -> (i32, i32) {
    %c0_i32 = arith.constant 0 : i32
    %c0_i32_0 = arith.constant 0 : i32
    %c0_i32_1 = arith.constant 0 : i32
    return %c0_i32, %c0_i32_0 : i32, i32
  }
  func.func @transform_8(%arg0: i32) -> (i32, i32) {
    %c0_i32 = arith.constant 0 : i32
    %c0_i32_0 = arith.constant 0 : i32
    %c0_i32_1 = arith.constant 0 : i32
    return %c0_i32, %c0_i32_0 : i32, i32
  }
  func.func @transform_9(%arg0: i32) -> (i32, i32) {
    %c0_i32 = arith.constant 0 : i32
    %c0_i32_0 = arith.constant 0 : i32
    return %c0_i32, %arg0 : i32, i32
  }
}

</mosaic_0001>

<bundles_post_ra>
// kernel: tpu_custom_call.1
= control target key start
LH: loop header
LB: loop body
LE: loop exit
PB: predicated region body
PF: predicated region fallthrough
CT: control target
= control target key end

     0   :  { %14 = vsyncpa [#allocation3], 0  ;;  %s617_s0 = inlined_call_operand.hbm [shape: f32[8,16], index: 0, kind: input, shape index: {}]   ;;  %s618_s1 = inlined_call_operand.hbm [shape: f32[16,32], index: 1, kind: input, shape index: {}]   ;;  %s619_s2 = inlined_call_operand.vmem [shape: f32[1,32], index: 2, kind: input, shape index: {}]   ;;  %s620_s3 = inlined_call_operand.vmem [shape: f32[32,32], index: 3, kind: input, shape index: {}]   ;;  %s621_s4 = inlined_call_operand.vmem [shape: f32[1,32], index: 4, kind: input, shape index: {}]   ;;  %s622_s5 = inlined_call_operand.vmem [shape: f32[8,32], index: 5, kind: input, shape index: {}]   ;;  %s623_s6 = inlined_call_operand.vmem [shape: f32[8,1], index: 6, kind: input, shape index: {}]   ;;  %s624_s7 = inlined_call_operand.vmem [shape: f32[8,1], index: 7, kind: input, shape index: {}]   ;;  %s625_s8 = inlined_call_operand.vmem [shape: f32[8,1], index: 8, kind: input, shape index: {}]   ;;  %s626_s9 = inlined_call_operand.hbm [shape: f32[8,8], index: 9, kind: output, shape index: {}]  }
   0x1   :  { %15 = vsyncpa [#allocation6], 0 }
   0x2   :  { %16 = vsyncpa [#allocation4], 0  ;;  %s479_s30 = smov [#allocation2]   ;;  %s480_s11 = smov [#allocation5]  }
   0x3   :  { %s23_s10 = sshll.u32 %s479_s30, 4  ;;  %s32_s12 = sshll.u32 %s480_s11, 4  ;;  %s24_s10 = int_to_ptr.vmem [resolvable:$true] %s23_s10  ;;  %s538_s12 = int_to_ptr.vmem [resolvable:$true] %s32_s12 }
   0x4   :  { %s407_s15 = scalar_lea.hbm %s617_s0, 128 }
   0x5   :  { %p408_p0 = scmp.ne.s32.totalorder %s617_s0, %s407_s15  ;;  %p411_p1 = scmp.lt.u32.totalorder %s407_s15, %s617_s0 }
   0x7   :  { %p413_p2 = pnand %p411_p1, %p408_p0 }
   0x9   :  { %416 = shalt.err (!%p413_p2)
}
   0xa   :  { %s417_s20 = scalar_lea.vmem %s24_s10, 128  ;;  %p422_p4 = scmp.lt.s32.totalorder %s24_s10, %s24_s10 }
   0xb   :  { %p418_p3 = scmp.ne.s32.totalorder %s24_s10, %s417_s20  ;;  %p423_p5 = scmp.lt.s32.totalorder %s417_s20, %s417_s20 }
   0xd   :  { %p424_p6 = por %p423_p5, %p422_p4 }
   0xf   :  { %p425_p7 = pnand %p424_p6, %p418_p3 }
  0x11   :  { %428 = shalt.err (!%p425_p7)
}
  0x12   :  { %26 = dma.hbm_to_vmem [thread:$0]  %s617_s0, 128, %s24_s10, [#allocation3]  }
  0x13   :  { %s429_s25 = scalar_lea.hbm %s618_s1, 256 }
  0x14   :  { %p430_p8 = scmp.ne.s32.totalorder %s618_s1, %s429_s25  ;;  %p433_p9 = scmp.lt.u32.totalorder %s429_s25, %s618_s1 }
  0x16   :  { %p435_p10 = pnand %p433_p9, %p430_p8 }
  0x18   :  { %438 = shalt.err (!%p435_p10)
}
  0x19   :  { %s439_s30 = scalar_lea.vmem %s538_s12, 256  ;;  %p444_p12 = scmp.lt.s32.totalorder %s538_s12, %s538_s12 }
  0x1a   :  { %p440_p11 = scmp.ne.s32.totalorder %s538_s12, %s439_s30  ;;  %p445_p13 = scmp.lt.s32.totalorder %s439_s30, %s439_s30 }
  0x1c   :  { %p446_p0 = por %p445_p13, %p444_p12 }
  0x1e   :  { %p447_p1 = pnand %p446_p0, %p440_p11 }
  0x20   :  { %450 = shalt.err (!%p447_p1)
}
  0x21   :  { %s481_s0 = smov 128   ;;  %s482_s10 = smov 8  }
  0x22   :  { %38 = dma.hbm_to_vmem [thread:$0]  %s618_s1, 256, %s538_s12, [#allocation6], %s481_s0, %s481_s0, %s482_s10  }
  0x23   :  { %473 = dma.done.wait [#allocation3], 128  }
  0x24   :  { %474 = vsyncadd [#allocation3], 4294967168 }
  0x25   :  { %475 = dma.done.wait [#allocation6], 256  }
  0x26   :  { %476 = vsyncadd [#allocation6], 4294967040  ;;  %v483_v0 = vmov 0.0|0.0   ;;  %vm484_vm0 = vmmov 0   ;;  %v485_v1 = vmov 0.0   ;;  %v60_v2 = vld [vmem:[#allocation5] sm:$0xff] }
  0x27   :  { %385 = vmatprep.subr.bf16.mxu0 %v483_v0  ;;  %366 = vmatprep.mubr.msk.f32.mxu0 %vm484_vm0, %v485_v1  ;;  %v61_v3 = vld [vmem:[#allocation5 + $0x8] sm:$0xff]  ;;  %v144_v5 = vld [vmem:[%s620_s3] sm:$0xff]  ;;  %v145_v6 = vld [vmem:[%s620_s3 + $0x8] sm:$0xff]  ;;  %vm69_vm1 = vcmask 130048   ;;  %vm155_vm2 = vcmask 261120   ;;  %v486_v19 = vmov 0  }
  0x28   :  { %388 = vmatprep.subr.bf16.mxu1 %v483_v0  ;;  %377 = vmatprep.mubr.msk.f32.mxu1 %vm484_vm0, %v485_v1  ;;  %v386_v4 = vpack.c.bf16 %v61_v3, %v60_v2  ;;  %v389_v7 = vpack.c.bf16 %v145_v6, %v144_v5  ;;  %v59_v8 = vld [vmem:[#allocation2] sm:$0xff]  ;;  %v146_v9 = vld [vmem:[%s620_s3 + $0x10] sm:$0xff]  ;;  %v147_v10 = vld [vmem:[%s620_s3 + $0x18] sm:$0xff]  ;;  %vm328_vm3 = vcmask 64512  }
  0x29   :  { %v392_v11 = vpack.c.bf16 %v147_v10, %v146_v9  ;;  %v346_v12 = vld [vmem:[%s619_s2] ss:$0 sm:$0xff]  ;;  %403 = vset.pattern.permute.xlu0 %v486_v19  ;;  %404 = vset.pattern.permute.xlu1 %v486_v19 }
  0x2a   :  { %387 = vmatpush3.bf16.msra.mxu0 %v386_v4  ;;  %390 = vmatpush3.bf16.msra.mxu1 %v389_v7  ;;  %v231_v17 = vld [vmem:[%s623_s6] sm:$0xff] }
  0x2b   :  { %380 = vmatprep.subr.mxu0 %v485_v1  ;;  %391 = vmatprep.subr.bf16.mxu1 %v483_v0  ;;  %v321_v18 = vld [vmem:[%s625_s8] sm:$0xff] }
  0x2c   :  { %234 = vperm.xlu0 %403, %v231_v17   ;;  %324 = vperm.xlu1 %404, %v321_v18   ;;  %v314_v20 = vld [vmem:[%s624_s7] sm:$0xff] }
  0x2d   :  { %367 = vmatmul.mubr.msk.f32.vlgmr.msra.gmra.mrb[0].mxu0 %vm69_vm1, %v59_v8  ;;  %v348_v21 = vld [vmem:[%s621_s4] ss:$0 sm:$0xff]  ;;  %s487_s4 = smov [#allocation7]  }
  0x2e   :  { %382 = vmatprep.mubr.msk.f32.mxu0 %vm484_vm0, %v485_v1  ;;  %393 = vmatpush3.bf16.msra.mxu1 %v392_v11  ;;  %v230_v26 = vld [vmem:[%s622_s5] sm:$0xff]  ;;  %s336_s7 = sshll.u32 %s487_s4, 4  ;;  %s337_s7 = int_to_ptr.vmem [resolvable:$true] %s336_s7 }
  0x2f   :  { %s451_s28 = scalar_lea.vmem %s337_s7, 128  ;;  %p456_p3 = scmp.lt.s32.totalorder %s337_s7, %s337_s7 }
  0x30   :  { %317 = vperm.xlu0 %403, %v314_v20   ;;  %p452_p2 = scmp.ne.s32.totalorder %s337_s7, %s451_s28  ;;  %p457_p4 = scmp.lt.s32.totalorder %s451_s28, %s451_s28 }
  0x32   :  { %p458_p5 = por %p457_p4, %p456_p3 }
  0x34   :  { %p459_p6 = pnand %p458_p5, %p452_p2 }
  0xab   :  { %v235_v27 = vpop.permute.xlu0 %234  ;;  %v325_v33 = vpop.permute.xlu1 %324 }
  0xaf   :  { %v318_v32 = vpop.permute.xlu0 %317 }
 0x100   :  { %v139_v13 = vpop.f32.mrb[0].mxu0 }
 0x101   :  { %v140_v14 = vadd.f32 %v346_v12, %v139_v13  ;;  %v368_v15 = vpop.f32.mrb[1].mxu0 }
 0x103   :  { %v143_v16 = vmax.f32 %v140_v14, 0.0 }
 0x105   :  { %378 = vmatmul.mubr.msk.f32.vlgmr.msra.gmra.mrb[0].mxu1 %vm155_vm2, %v143_v16 }
 0x1d8   :  { %v225_v22 = vpop.f32.mrb[0].mxu1 }
 0x1d9   :  { %v226_v23 = vadd.f32 %v348_v21, %v225_v22  ;;  %v379_v24 = vpop.f32.mrb[1].mxu1 }
 0x1db   :  { %v229_v25 = vmax.f32 %v226_v23, 0.0 }
 0x1dd   :  { %381 = vmatpush3.xpose.msk.msra.mxu0 %vm155_vm2, %v229_v25 }
 0x1e0   :  { %383 = vmatmul.mubr.msk.f32.vlgmr.msra.gmra.mrb[2].mxu0 %vm155_vm2, %v230_v26 }
 0x2b3   :  { %v309_v28 = vpop.f32.mrb[2].mxu0 }
 0x2b4   :  { %v310_v29 = vadd.f32 %v309_v28, %v235_v27  ;;  %v384_v30 = vpop.f32.mrb[3].mxu0 }
 0x2b6   :  { %405 = vtanh.f32 %v310_v29 }
 0x2c0   :  { %v406_v31 = vpop.eup %405 }
 0x2c1   :  { %v320_v34 = vmul.f32 %v406_v31, %v318_v32 }
 0x2c3   :  { %v327_v35 = vadd.f32 %v325_v33, %v320_v34 }
 0x2c5   :  { %329 = vst.msk [vmem:[#allocation7] sm:$0xff] %vm328_vm3, %v327_v35 }
 0x2c6   :  { %462 = shalt.err (!%p459_p6)
}
 0x2c7   :  { %s463_s30 = scalar_lea.hbm %s626_s9, 128 }
 0x2c8   :  { %p464_p7 = scmp.ne.s32.totalorder %s626_s9, %s463_s30  ;;  %p467_p8 = scmp.lt.u32.totalorder %s463_s30, %s626_s9 }
 0x2ca   :  { %p469_p9 = pnand %p467_p8, %p464_p7 }
 0x2cc   :  { %472 = shalt.err (!%p469_p9)
}
 0x2cd   :  { %339 = dma.vmem_to_hbm [thread:$0]  %s337_s7, 128, %s626_s9, [#allocation4]  }
 0x2ce   :  { %477 = dma.done.wait [#allocation4], 128  }
 0x2cf   :  { %478 = vsyncadd [#allocation4], 4294967168 }
 0x2d0   :  { %343 = vsyncpa [#allocation3], 1 }
 0x2d1   :  { %344 = vsyncpa [#allocation6], 1 }
 0x2d2   :  { %345 = vsyncpa [#allocation4], 1 }

</bundles_post_ra>
